<compile_context>
chip_gen: v6e
topology: v6e:2x2x1
jax: 0.10.0
libtpu: 0.0.40
codegen_flags: <defaults>
</compile_context>

<pallas_src>
import functools
import math

import jax
import jax.numpy as jnp
from jax import lax
from jax.experimental import pallas as pl
from jax.experimental.pallas import tpu as pltpu


_B_TILE = 8                       # one sublane group
_HEAD_PAD = 128                   # pad fused head class dim to one lane tile
_VMEM_LIMIT = 32 * 1024 * 1024


# ----------------------------------------------------------------------------
# Pallas kernel: fused fwd+bwd tanh-RNN recurrence over one (batch, time) tile.
#   xw_f_ref : (TT, BT, H)  precomputed x @ W_ih_fwd + b_fwd (forward time order)
#   xw_b_ref : (TT, BT, H)  precomputed x @ W_ih_bwd + b_bwd (forward time order;
#                           the grid walks its time tiles in REVERSE order)
#   whh_*    : (H, H)       hidden-to-hidden weights (pre-transposed)
#   out_*    : (TT, BT, H)  hidden-state sequences, both in forward time order
#   h*_ref   : (BT, H)      VMEM scratch carrying h_{t-1}; persists across the
#                           sequential time-tile grid axis
# Grid: (batch_tiles [parallel], time_tiles [arbitrary]).
# ----------------------------------------------------------------------------
def _birnn_scan_kernel(xw_f_ref, xw_b_ref, whh_f_ref, whh_b_ref,
                       out_f_ref, out_b_ref, hf_ref, hb_ref):
    @pl.when(pl.program_id(1) == 0)
    def _init():
        hf_ref[...] = jnp.zeros_like(hf_ref)
        hb_ref[...] = jnp.zeros_like(hb_ref)

    tt = xw_f_ref.shape[0]
    whh_f = whh_f_ref[...]          # hoisted out of the time loop
    whh_b = whh_b_ref[...]

    def step(t, carry):
        r = tt - 1 - t              # backward direction walks this tile in reverse
        hf = jnp.tanh(
            xw_f_ref[t]
            + jnp.dot(hf_ref[...], whh_f, preferred_element_type=jnp.float32))
        hb = jnp.tanh(
            xw_b_ref[r]
            + jnp.dot(hb_ref[...], whh_b, preferred_element_type=jnp.float32))
        hf_ref[...] = hf
        hb_ref[...] = hb
        out_f_ref[t] = hf.astype(out_f_ref.dtype)
        out_b_ref[r] = hb.astype(out_b_ref.dtype)
        return carry

    # Short fixed trip count: fully unroll so the LLO scheduler can overlap
    # step t+1's independent loads/stores with step t's matmul->tanh chain.
    lax.fori_loop(0, tt, step, 0, unroll=True)


# ----------------------------------------------------------------------------
# Pallas kernel: fused (3-in-1) unidirectional head RNN over one tile.
#   xw_ref  : (TT, BT, C)   precomputed x @ W_ih_fused + b_fused (C = 128 lanes)
#   whh_ref : (C, C)        block-diagonal fused W_hh (zero-padded)
#   out_ref : (TT, BT, C)   lane-dense hidden-state sequence
#   h_ref   : (BT, C)       VMEM scratch carrying h_{t-1}
# ----------------------------------------------------------------------------
def _head_scan_kernel(xw_ref, whh_ref, out_ref, h_ref):
    @pl.when(pl.program_id(1) == 0)
    def _init():
        h_ref[...] = jnp.zeros_like(h_ref)

    tt = xw_ref.shape[0]
    whh = whh_ref[...]

    def step(t, carry):
        h = jnp.tanh(
            xw_ref[t]
            + jnp.dot(h_ref[...], whh, preferred_element_type=jnp.float32))
        h_ref[...] = h
        out_ref[t] = h.astype(out_ref.dtype)
        return carry

    lax.fori_loop(0, tt, step, 0, unroll=True)


# ----------------------------------------------------------------------------
# Wrappers
# ----------------------------------------------------------------------------
def _pick_t_tile(T, t_tile):
    if t_tile is None:
        t_tile = min(T, 16)
    t_tile = min(t_tile, T)
    if T % t_tile != 0:
        t_tile = math.gcd(T, t_tile)
    return max(t_tile, 1)


def birnn_layer(xw_f, xw_b, whh_f, whh_b, *, t_tile=None):
    """Fused bidirectional tanh-RNN recurrence; inputs are pre-projected."""
    T, b_pad, H = xw_f.shape
    assert b_pad % _B_TILE == 0
    tt = _pick_t_tile(T, t_tile)
    n_t = T // tt
    n_b = b_pad // _B_TILE

    fwd_spec = pl.BlockSpec((tt, _B_TILE, H), lambda b, j: (j, b, 0))
    bwd_spec = pl.BlockSpec((tt, _B_TILE, H), lambda b, j: (n_t - 1 - j, b, 0))
    w_spec = pl.BlockSpec((H, H), lambda b, j: (0, 0))

    cost = pl.CostEstimate(
        flops=2 * 2 * T * b_pad * H * H,          # both directions, h @ W_hh
        transcendentals=2 * T * b_pad * H,        # tanh
        bytes_accessed=4 * (4 * T * b_pad * H + 2 * H * H))

    return pl.pallas_call(
        _birnn_scan_kernel,
        out_shape=(jax.ShapeDtypeStruct((T, b_pad, H), jnp.float32),
                   jax.ShapeDtypeStruct((T, b_pad, H), jnp.float32)),
        grid=(n_b, n_t),
        in_specs=[fwd_spec, bwd_spec, w_spec, w_spec],
        out_specs=(fwd_spec, bwd_spec),
        scratch_shapes=[pltpu.VMEM((_B_TILE, H), jnp.float32),
                        pltpu.VMEM((_B_TILE, H), jnp.float32)],
        compiler_params=pltpu.CompilerParams(
            dimension_semantics=("parallel", "arbitrary"),
            vmem_limit_bytes=_VMEM_LIMIT),
        cost_estimate=cost,
    )(xw_f, xw_b, whh_f, whh_b)


def head_rnn(xw, whh, *, t_tile=None):
    """Single fused (3 heads in one) unidirectional tanh-RNN recurrence."""
    T, b_pad, C = xw.shape
    assert b_pad % _B_TILE == 0
    tt = _pick_t_tile(T, t_tile)
    n_t = T // tt
    n_b = b_pad // _B_TILE

    seq_spec = pl.BlockSpec((tt, _B_TILE, C), lambda b, j: (j, b, 0))
    w_spec = pl.BlockSpec((C, C), lambda b, j: (0, 0))

    cost = pl.CostEstimate(
        flops=2 * T * b_pad * C * C,
        transcendentals=T * b_pad * C,
        bytes_accessed=4 * (2 * T * b_pad * C + C * C))

    return pl.pallas_call(
        _head_scan_kernel,
        out_shape=jax.ShapeDtypeStruct((T, b_pad, C), jnp.float32),
        grid=(n_b, n_t),
        in_specs=[seq_spec, w_spec],
        out_specs=seq_spec,
        scratch_shapes=[pltpu.VMEM((_B_TILE, C), jnp.float32)],
        compiler_params=pltpu.CompilerParams(
            dimension_semantics=("parallel", "arbitrary"),
            vmem_limit_bytes=_VMEM_LIMIT),
        cost_estimate=cost,
    )(xw, whh)


# ----------------------------------------------------------------------------
# Parameters (deterministic, PyTorch-style uniform(-k, k) init)
# ----------------------------------------------------------------------------
def _rnn_params(key, in_dim, hidden):
    k = 1.0 / jnp.sqrt(jnp.float32(hidden))
    k_ih, k_hh, k_bi, k_bh = jax.random.split(key, 4)
    w_ih = jax.random.uniform(k_ih, (in_dim, hidden), jnp.float32, -k, k)
    w_hh = jax.random.uniform(k_hh, (hidden, hidden), jnp.float32, -k, k)
    b_ih = jax.random.uniform(k_bi, (hidden,), jnp.float32, -k, k)
    b_hh = jax.random.uniform(k_bh, (hidden,), jnp.float32, -k, k)
    return w_ih, w_hh, (b_ih + b_hh).reshape(1, hidden)


def _fuse_heads(head_params, c_pad=_HEAD_PAD):
    """Concatenate head W_ih, block-diagonalise W_hh, pad to c_pad lanes.
    Padded hidden units see zero weights/bias, so they stay exactly 0."""
    in_dim = head_params[0][0].shape[0]
    sizes = [p[1].shape[0] for p in head_params]
    assert sum(sizes) <= c_pad
    wih = jnp.zeros((in_dim, c_pad), jnp.float32)
    whh = jnp.zeros((c_pad, c_pad), jnp.float32)
    bias = jnp.zeros((1, c_pad), jnp.float32)
    off = 0
    for (wi, wh, b), c in zip(head_params, sizes):
        wih = wih.at[:, off:off + c].set(wi)
        whh = whh.at[off:off + c, off:off + c].set(wh)
        bias = bias.at[:, off:off + c].set(b)
        off += c
    return wih, whh, bias


def make_params(key, vocab_size, embedding_dim, hidden_size, num_layers,
                cap_class_size=4, initial_punct_class_size=2,
                final_punct_class_size=4):
    keys = jax.random.split(key, 2 * num_layers + 4)
    params = {}
    params["emb"] = jax.random.normal(
        keys[0], (vocab_size, embedding_dim), jnp.float32)   # nn.Embedding N(0,1)
    rnn_layers = []
    for layer in range(num_layers):
        in_dim = embedding_dim if layer == 0 else 2 * hidden_size
        fwd = _rnn_params(keys[1 + 2 * layer], in_dim, hidden_size)
        bwd = _rnn_params(keys[2 + 2 * layer], in_dim, hidden_size)
        rnn_layers.append((fwd, bwd))
    params["rnn"] = rnn_layers
    params["head_init"] = _rnn_params(
        keys[2 * num_layers + 1], 2 * hidden_size, initial_punct_class_size)
    params["head_final"] = _rnn_params(
        keys[2 * num_layers + 2], 2 * hidden_size, final_punct_class_size)
    params["head_cap"] = _rnn_params(
        keys[2 * num_layers + 3], 2 * hidden_size, cap_class_size)
    params["heads_fused"] = _fuse_heads(
        [params["head_init"], params["head_final"], params["head_cap"]])
    return params


# ----------------------------------------------------------------------------
# Forward pass (mirrors RNN_Bidireccional.forward with bert_embedding=False).
# ----------------------------------------------------------------------------
def _project(feats, w_ih, bias):
    """concat(feats, axis=-1) @ w_ih + bias, computed WITHOUT materialising the
    concatenation: w_ih rows are split per feature block.  One big batched GEMM
    per term -- this is the x @ W_ih hoisted off the sequential path."""
    off = 0
    acc = bias
    for f in feats:
        d = f.shape[-1]
        acc = acc + jnp.einsum("tbi,ih->tbh", f, w_ih[off:off + d],
                               preferred_element_type=jnp.float32)
        off += d
    return acc


def forward(token_ids, params, *, t_tile=4):
    """Returns (out_init, out_final, out_cap), each (B, T, C): raw RNN hidden
    states, exactly what the PyTorch forward() returns (no softmax applied)."""
    B, T = token_ids.shape

    # Embedding lookup (XLA gather), time-major, batch padded to sublane tile.
    x = jnp.take(params["emb"], token_ids, axis=0)           # (B, T, E)
    x = jnp.transpose(x, (1, 0, 2)).astype(jnp.float32)      # (T, B, E)
    b_pad = -(-B // _B_TILE) * _B_TILE
    if b_pad != B:
        x = jnp.pad(x, ((0, 0), (0, b_pad - B), (0, 0)))

    # Stacked bidirectional tanh-RNN; (out_f, out_b) are never concatenated.
    feats = (x,)
    for (wih_f, whh_f, b_f), (wih_b, whh_b, b_b) in params["rnn"]:
        xw_f = _project(feats, wih_f, b_f)                   # (T, Bp, H)
        xw_b = _project(feats, wih_b, b_b)                   # (T, Bp, H)
        out_f, out_b = birnn_layer(xw_f, xw_b, whh_f, whh_b, t_tile=t_tile)
        feats = (out_f, out_b)

    # Three head RNNs fused into one lane-padded (128-wide) scan.
    wih_h, whh_h, b_h = params["heads_fused"]
    xw_h = _project(feats, wih_h, b_h)                       # (T, Bp, 128)
    head_out = head_rnn(xw_h, whh_h, t_tile=t_tile)

    # Slice true class widths, crop batch padding, back to batch-first.
    sizes = (params["head_init"][1].shape[0],
             params["head_final"][1].shape[0],
             params["head_cap"][1].shape[0])
    outs, off = [], 0
    for c in sizes:
        o = head_out[:, :B, off:off + c]                     # (T, B, C)
        outs.append(jnp.transpose(o, (1, 0, 2)))             # (B, T, C)
        off += c
    return tuple(outs)


# ----------------------------------------------------------------------------
# Pure-JAX reference (unfused, unpadded) for correctness checking.
# ----------------------------------------------------------------------------
def _rnn_scan_ref(x_tm, w_ih, w_hh, b):
    h0 = jnp.zeros((x_tm.shape[1], w_hh.shape[0]), jnp.float32)

    def step(h, x_t):
        h_new = jnp.tanh(x_t @ w_ih + h @ w_hh + b)
        return h_new, h_new

    _, ys = lax.scan(step, h0, x_tm)
    return ys


def forward_ref(token_ids, params):
    x = jnp.take(params["emb"], token_ids, axis=0)
    x = jnp.transpose(x, (1, 0, 2)).astype(jnp.float32)
    for fwd, bwd in params["rnn"]:
        out_f = _rnn_scan_ref(x, *fwd)
        out_b = _rnn_scan_ref(x[::-1], *bwd)[::-1]
        x = jnp.concatenate([out_f, out_b], axis=-1)
    to_bf = lambda o: jnp.transpose(o, (1, 0, 2))
    return (to_bf(_rnn_scan_ref(x, *params["head_init"])),
            to_bf(_rnn_scan_ref(x, *params["head_final"])),
            to_bf(_rnn_scan_ref(x, *params["head_cap"])))


if __name__ == "__main__":
    B, T = 2, 8
    vocab_size = 100
    embedding_dim = 32
    hidden_size = 32
    num_layers = 2

    key = jax.random.PRNGKey(0)
    k_params, k_ids = jax.random.split(key)
    params = make_params(k_params, vocab_size, embedding_dim, hidden_size,
                         num_layers)
    token_ids = jax.random.randint(k_ids, (B, T), 0, vocab_size, jnp.int32)

    # t_tile=4 -> 2 sequential time tiles: exercises the hidden-state carry
    # across grid steps and the pl.when zero-init guard.
    fwd_jit = jax.jit(functools.partial(forward, t_tile=4))
    out_init, out_final, out_cap = fwd_jit(token_ids, params)
    jax.block_until_ready((out_init, out_final, out_cap))

    assert out_init.shape == (B, T, 2)
    assert out_final.shape == (B, T, 4)
    assert out_cap.shape == (B, T, 4)

    # Correctness check against a pure-JAX lax.scan reference.
    ref_init, ref_final, ref_cap = jax.jit(forward_ref)(token_ids, params)
    jax.block_until_ready((ref_init, ref_final, ref_cap))
    for got, ref in ((out_init, ref_init), (out_final, ref_final),
                     (out_cap, ref_cap)):
        assert jnp.allclose(got, ref, atol=1e-4, rtol=1e-4), (
            float(jnp.max(jnp.abs(got - ref))))

    print("KERNEL_OK")
</pallas_src>

<mosaic_0001>
module attributes {stable_mosaic.version = 11 : i64} {
  func.func @_birnn_scan_kernel(%arg0: i32, %arg1: i32, %arg2: memref<4x8x32xf32, #tpu.memory_space<vmem>>, %arg3: memref<4x8x32xf32, #tpu.memory_space<vmem>>, %arg4: memref<32x32xf32, #tpu.memory_space<vmem>>, %arg5: memref<32x32xf32, #tpu.memory_space<vmem>>, %arg6: memref<4x8x32xf32, #tpu.memory_space<vmem>>, %arg7: memref<4x8x32xf32, #tpu.memory_space<vmem>>, %arg8: memref<8x32xf32, #tpu.memory_space<vmem>>, %arg9: memref<8x32xf32, #tpu.memory_space<vmem>>) attributes {dimension_semantics = [#tpu.dimension_semantics<parallel>, #tpu.dimension_semantics<arbitrary>], iteration_bounds = array<i64: 1, 2>, scalar_prefetch = 0 : i64, scratch_operands = 2 : i64, tpu.core_type = #tpu.core_type<tc>, window_params = [{transform_indices = @transform_0, window_bounds = array<i64: 4, 8, 32>}, {transform_indices = @transform_1, window_bounds = array<i64: 4, 8, 32>}, {pipeline_mode = #tpu.pipeline_mode<synchronous>, transform_indices = @transform_2, window_bounds = array<i64: 32, 32>}, {pipeline_mode = #tpu.pipeline_mode<synchronous>, transform_indices = @transform_3, window_bounds = array<i64: 32, 32>}, {transform_indices = @transform_4, window_bounds = array<i64: 4, 8, 32>}, {transform_indices = @transform_5, window_bounds = array<i64: 4, 8, 32>}]} {
    %c0_i32 = arith.constant 0 : i32
    %0 = arith.cmpi eq, %arg1, %c0_i32 : i32
    %1 = arith.extui %0 : i1 to i32
    %c0_i32_0 = arith.constant 0 : i32
    %2 = arith.cmpi ne, %1, %c0_i32_0 : i32
    scf.if %2 {
      %cst_80 = arith.constant 0.000000e+00 : f32
      %105 = vector.broadcast %cst_80 : f32 to vector<8x32xf32>
      %c0_81 = arith.constant 0 : index
      %c0_82 = arith.constant 0 : index
      %106 = vector.load %arg8[%c0_81, %c0_82] : memref<8x32xf32, #tpu.memory_space<vmem>>, vector<8x32xf32>
      tpu.vector_store %arg8[%c0_81, %c0_82], %105 {strides = array<i32>} : memref<8x32xf32, #tpu.memory_space<vmem>>, vector<8x32xf32>,
      %cst_83 = arith.constant 0.000000e+00 : f32
      %107 = vector.broadcast %cst_83 : f32 to vector<8x32xf32>
      %c0_84 = arith.constant 0 : index
      %c0_85 = arith.constant 0 : index
      %108 = vector.load %arg9[%c0_84, %c0_85] : memref<8x32xf32, #tpu.memory_space<vmem>>, vector<8x32xf32>
      tpu.vector_store %arg9[%c0_84, %c0_85], %107 {strides = array<i32>} : memref<8x32xf32, #tpu.memory_space<vmem>>, vector<8x32xf32>,
    } else {
    }
    %c0 = arith.constant 0 : index
    %c0_1 = arith.constant 0 : index
    %3 = vector.load %arg4[%c0, %c0_1] : memref<32x32xf32, #tpu.memory_space<vmem>>, vector<32x32xf32>
    %c0_2 = arith.constant 0 : index
    %c0_3 = arith.constant 0 : index
    %4 = vector.load %arg5[%c0_2, %c0_3] : memref<32x32xf32, #tpu.memory_space<vmem>>, vector<32x32xf32>
    %c0_i32_4 = arith.constant 0 : i32
    %c3_i32 = arith.constant 3 : i32
    %5 = arith.subi %c3_i32, %c0_i32_4 : i32
    %6 = arith.index_cast %c0_i32_4 : i32 to index
    %c0_5 = arith.constant 0 : index
    %c0_6 = arith.constant 0 : index
    %7 = vector.load %arg2[%6, %c0_5, %c0_6] : memref<4x8x32xf32, #tpu.memory_space<vmem>>, vector<1x8x32xf32>
    %8 = vector.shape_cast %7 : vector<1x8x32xf32> to vector<8x32xf32>
    %c0_7 = arith.constant 0 : index
    %c0_8 = arith.constant 0 : index
    %9 = vector.load %arg8[%c0_7, %c0_8] : memref<8x32xf32, #tpu.memory_space<vmem>>, vector<8x32xf32>
    %cst = arith.constant dense<0.000000e+00> : vector<8x32xf32>
    %10 = tpu.matmul %9, %3, %cst {dimension_numbers = #tpu.dot_dimension_numbers<[1], [0], [0], [1], [0, 0, 1, 1], [], []>} : vector<8x32xf32>, vector<32x32xf32>, vector<8x32xf32> -> vector<8x32xf32>
    %11 = arith.addf %8, %10 : vector<8x32xf32>
    %12 = math.tanh %11 : vector<8x32xf32>
    %13 = arith.index_cast %5 : i32 to index
    %c0_9 = arith.constant 0 : index
    %c0_10 = arith.constant 0 : index
    %14 = vector.load %arg3[%13, %c0_9, %c0_10] : memref<4x8x32xf32, #tpu.memory_space<vmem>>, vector<1x8x32xf32>
    %15 = vector.shape_cast %14 : vector<1x8x32xf32> to vector<8x32xf32>
    %c0_11 = arith.constant 0 : index
    %c0_12 = arith.constant 0 : index
    %16 = vector.load %arg9[%c0_11, %c0_12] : memref<8x32xf32, #tpu.memory_space<vmem>>, vector<8x32xf32>
    %cst_13 = arith.constant dense<0.000000e+00> : vector<8x32xf32>
    %17 = tpu.matmul %16, %4, %cst_13 {dimension_numbers = #tpu.dot_dimension_numbers<[1], [0], [0], [1], [0, 0, 1, 1], [], []>} : vector<8x32xf32>, vector<32x32xf32>, vector<8x32xf32> -> vector<8x32xf32>
    %18 = arith.addf %15, %17 : vector<8x32xf32>
    %19 = math.tanh %18 : vector<8x32xf32>
    %c0_14 = arith.constant 0 : index
    %c0_15 = arith.constant 0 : index
    %20 = vector.load %arg8[%c0_14, %c0_15] : memref<8x32xf32, #tpu.memory_space<vmem>>, vector<8x32xf32>
    tpu.vector_store %arg8[%c0_14, %c0_15], %12 {strides = array<i32>} : memref<8x32xf32, #tpu.memory_space<vmem>>, vector<8x32xf32>,
    %c0_16 = arith.constant 0 : index
    %c0_17 = arith.constant 0 : index
    %21 = vector.load %arg9[%c0_16, %c0_17] : memref<8x32xf32, #tpu.memory_space<vmem>>, vector<8x32xf32>
    tpu.vector_store %arg9[%c0_16, %c0_17], %19 {strides = array<i32>} : memref<8x32xf32, #tpu.memory_space<vmem>>, vector<8x32xf32>,
    %22 = arith.index_cast %c0_i32_4 : i32 to index
    %c0_18 = arith.constant 0 : index
    %c0_19 = arith.constant 0 : index
    %23 = vector.load %arg6[%22, %c0_18, %c0_19] : memref<4x8x32xf32, #tpu.memory_space<vmem>>, vector<1x8x32xf32>
    %24 = vector.shape_cast %23 : vector<1x8x32xf32> to vector<8x32xf32>
    %25 = vector.shape_cast %12 : vector<8x32xf32> to vector<1x8x32xf32>
    tpu.vector_store %arg6[%22, %c0_18, %c0_19], %25 {strides = array<i32>} : memref<4x8x32xf32, #tpu.memory_space<vmem>>, vector<1x8x32xf32>,
    %26 = arith.index_cast %5 : i32 to index
    %c0_20 = arith.constant 0 : index
    %c0_21 = arith.constant 0 : index
    %27 = vector.load %arg7[%26, %c0_20, %c0_21] : memref<4x8x32xf32, #tpu.memory_space<vmem>>, vector<1x8x32xf32>
    %28 = vector.shape_cast %27 : vector<1x8x32xf32> to vector<8x32xf32>
    %29 = vector.shape_cast %19 : vector<8x32xf32> to vector<1x8x32xf32>
    tpu.vector_store %arg7[%26, %c0_20, %c0_21], %29 {strides = array<i32>} : memref<4x8x32xf32, #tpu.memory_space<vmem>>, vector<1x8x32xf32>,
    %c1_i32 = arith.constant 1 : i32
    %c3_i32_22 = arith.constant 3 : i32
    %30 = arith.subi %c3_i32_22, %c1_i32 : i32
    %31 = arith.index_cast %c1_i32 : i32 to index
    %c0_23 = arith.constant 0 : index
    %c0_24 = arith.constant 0 : index
    %32 = vector.load %arg2[%31, %c0_23, %c0_24] : memref<4x8x32xf32, #tpu.memory_space<vmem>>, vector<1x8x32xf32>
    %33 = vector.shape_cast %32 : vector<1x8x32xf32> to vector<8x32xf32>
    %c0_25 = arith.constant 0 : index
    %c0_26 = arith.constant 0 : index
    %34 = vector.load %arg8[%c0_25, %c0_26] : memref<8x32xf32, #tpu.memory_space<vmem>>, vector<8x32xf32>
    %cst_27 = arith.constant dense<0.000000e+00> : vector<8x32xf32>
    %35 = tpu.matmul %34, %3, %cst_27 {dimension_numbers = #tpu.dot_dimension_numbers<[1], [0], [0], [1], [0, 0, 1, 1], [], []>} : vector<8x32xf32>, vector<32x32xf32>, vector<8x32xf32> -> vector<8x32xf32>
    %36 = arith.addf %33, %35 : vector<8x32xf32>
    %37 = math.tanh %36 : vector<8x32xf32>
    %38 = arith.index_cast %30 : i32 to index
    %c0_28 = arith.constant 0 : index
    %c0_29 = arith.constant 0 : index
    %39 = vector.load %arg3[%38, %c0_28, %c0_29] : memref<4x8x32xf32, #tpu.memory_space<vmem>>, vector<1x8x32xf32>
    %40 = vector.shape_cast %39 : vector<1x8x32xf32> to vector<8x32xf32>
    %c0_30 = arith.constant 0 : index
    %c0_31 = arith.constant 0 : index
    %41 = vector.load %arg9[%c0_30, %c0_31] : memref<8x32xf32, #tpu.memory_space<vmem>>, vector<8x32xf32>
    %cst_32 = arith.constant dense<0.000000e+00> : vector<8x32xf32>
    %42 = tpu.matmul %41, %4, %cst_32 {dimension_numbers = #tpu.dot_dimension_numbers<[1], [0], [0], [1], [0, 0, 1, 1], [], []>} : vector<8x32xf32>, vector<32x32xf32>, vector<8x32xf32> -> vector<8x32xf32>
    %43 = arith.addf %40, %42 : vector<8x32xf32>
    %44 = math.tanh %43 : vector<8x32xf32>
    %c0_33 = arith.constant 0 : index
    %c0_34 = arith.constant 0 : index
    %45 = vector.load %arg8[%c0_33, %c0_34] : memref<8x32xf32, #tpu.memory_space<vmem>>, vector<8x32xf32>
    tpu.vector_store %arg8[%c0_33, %c0_34], %37 {strides = array<i32>} : memref<8x32xf32, #tpu.memory_space<vmem>>, vector<8x32xf32>,
    %c0_35 = arith.constant 0 : index
    %c0_36 = arith.constant 0 : index
    %46 = vector.load %arg9[%c0_35, %c0_36] : memref<8x32xf32, #tpu.memory_space<vmem>>, vector<8x32xf32>
    tpu.vector_store %arg9[%c0_35, %c0_36], %44 {strides = array<i32>} : memref<8x32xf32, #tpu.memory_space<vmem>>, vector<8x32xf32>,
    %47 = arith.index_cast %c1_i32 : i32 to index
    %c0_37 = arith.constant 0 : index
    %c0_38 = arith.constant 0 : index
    %48 = vector.load %arg6[%47, %c0_37, %c0_38] : memref<4x8x32xf32, #tpu.memory_space<vmem>>, vector<1x8x32xf32>
    %49 = vector.shape_cast %48 : vector<1x8x32xf32> to vector<8x32xf32>
    %50 = vector.shape_cast %37 : vector<8x32xf32> to vector<1x8x32xf32>
    tpu.vector_store %arg6[%47, %c0_37, %c0_38], %50 {strides = array<i32>} : memref<4x8x32xf32, #tpu.memory_space<vmem>>, vector<1x8x32xf32>,
    %51 = arith.index_cast %30 : i32 to index
    %c0_39 = arith.constant 0 : index
    %c0_40 = arith.constant 0 : index
    %52 = vector.load %arg7[%51, %c0_39, %c0_40] : memref<4x8x32xf32, #tpu.memory_space<vmem>>, vector<1x8x32xf32>
    %53 = vector.shape_cast %52 : vector<1x8x32xf32> to vector<8x32xf32>
    %54 = vector.shape_cast %44 : vector<8x32xf32> to vector<1x8x32xf32>
    tpu.vector_store %arg7[%51, %c0_39, %c0_40], %54 {strides = array<i32>} : memref<4x8x32xf32, #tpu.memory_space<vmem>>, vector<1x8x32xf32>,
    %c2_i32 = arith.constant 2 : i32
    %c3_i32_41 = arith.constant 3 : i32
    %55 = arith.subi %c3_i32_41, %c2_i32 : i32
    %56 = arith.index_cast %c2_i32 : i32 to index
    %c0_42 = arith.constant 0 : index
    %c0_43 = arith.constant 0 : index
    %57 = vector.load %arg2[%56, %c0_42, %c0_43] : memref<4x8x32xf32, #tpu.memory_space<vmem>>, vector<1x8x32xf32>
    %58 = vector.shape_cast %57 : vector<1x8x32xf32> to vector<8x32xf32>
    %c0_44 = arith.constant 0 : index
    %c0_45 = arith.constant 0 : index
    %59 = vector.load %arg8[%c0_44, %c0_45] : memref<8x32xf32, #tpu.memory_space<vmem>>, vector<8x32xf32>
    %cst_46 = arith.constant dense<0.000000e+00> : vector<8x32xf32>
    %60 = tpu.matmul %59, %3, %cst_46 {dimension_numbers = #tpu.dot_dimension_numbers<[1], [0], [0], [1], [0, 0, 1, 1], [], []>} : vector<8x32xf32>, vector<32x32xf32>, vector<8x32xf32> -> vector<8x32xf32>
    %61 = arith.addf %58, %60 : vector<8x32xf32>
    %62 = math.tanh %61 : vector<8x32xf32>
    %63 = arith.index_cast %55 : i32 to index
    %c0_47 = arith.constant 0 : index
    %c0_48 = arith.constant 0 : index
    %64 = vector.load %arg3[%63, %c0_47, %c0_48] : memref<4x8x32xf32, #tpu.memory_space<vmem>>, vector<1x8x32xf32>
    %65 = vector.shape_cast %64 : vector<1x8x32xf32> to vector<8x32xf32>
    %c0_49 = arith.constant 0 : index
    %c0_50 = arith.constant 0 : index
    %66 = vector.load %arg9[%c0_49, %c0_50] : memref<8x32xf32, #tpu.memory_space<vmem>>, vector<8x32xf32>
    %cst_51 = arith.constant dense<0.000000e+00> : vector<8x32xf32>
    %67 = tpu.matmul %66, %4, %cst_51 {dimension_numbers = #tpu.dot_dimension_numbers<[1], [0], [0], [1], [0, 0, 1, 1], [], []>} : vector<8x32xf32>, vector<32x32xf32>, vector<8x32xf32> -> vector<8x32xf32>
    %68 = arith.addf %65, %67 : vector<8x32xf32>
    %69 = math.tanh %68 : vector<8x32xf32>
    %c0_52 = arith.constant 0 : index
    %c0_53 = arith.constant 0 : index
    %70 = vector.load %arg8[%c0_52, %c0_53] : memref<8x32xf32, #tpu.memory_space<vmem>>, vector<8x32xf32>
    tpu.vector_store %arg8[%c0_52, %c0_53], %62 {strides = array<i32>} : memref<8x32xf32, #tpu.memory_space<vmem>>, vector<8x32xf32>,
    %c0_54 = arith.constant 0 : index
    %c0_55 = arith.constant 0 : index
    %71 = vector.load %arg9[%c0_54, %c0_55] : memref<8x32xf32, #tpu.memory_space<vmem>>, vector<8x32xf32>
    tpu.vector_store %arg9[%c0_54, %c0_55], %69 {strides = array<i32>} : memref<8x32xf32, #tpu.memory_space<vmem>>, vector<8x32xf32>,
    %72 = arith.index_cast %c2_i32 : i32 to index
    %c0_56 = arith.constant 0 : index
    %c0_57 = arith.constant 0 : index
    %73 = vector.load %arg6[%72, %c0_56, %c0_57] : memref<4x8x32xf32, #tpu.memory_space<vmem>>, vector<1x8x32xf32>
    %74 = vector.shape_cast %73 : vector<1x8x32xf32> to vector<8x32xf32>
    %75 = vector.shape_cast %62 : vector<8x32xf32> to vector<1x8x32xf32>
    tpu.vector_store %arg6[%72, %c0_56, %c0_57], %75 {strides = array<i32>} : memref<4x8x32xf32, #tpu.memory_space<vmem>>, vector<1x8x32xf32>,
    %76 = arith.index_cast %55 : i32 to index
    %c0_58 = arith.constant 0 : index
    %c0_59 = arith.constant 0 : index
    %77 = vector.load %arg7[%76, %c0_58, %c0_59] : memref<4x8x32xf32, #tpu.memory_space<vmem>>, vector<1x8x32xf32>
    %78 = vector.shape_cast %77 : vector<1x8x32xf32> to vector<8x32xf32>
    %79 = vector.shape_cast %69 : vector<8x32xf32> to vector<1x8x32xf32>
    tpu.vector_store %arg7[%76, %c0_58, %c0_59], %79 {strides = array<i32>} : memref<4x8x32xf32, #tpu.memory_space<vmem>>, vector<1x8x32xf32>,
    %c3_i32_60 = arith.constant 3 : i32
    %c3_i32_61 = arith.constant 3 : i32
    %80 = arith.subi %c3_i32_61, %c3_i32_60 : i32
    %81 = arith.index_cast %c3_i32_60 : i32 to index
    %c0_62 = arith.constant 0 : index
    %c0_63 = arith.constant 0 : index
    %82 = vector.load %arg2[%81, %c0_62, %c0_63] : memref<4x8x32xf32, #tpu.memory_space<vmem>>, vector<1x8x32xf32>
    %83 = vector.shape_cast %82 : vector<1x8x32xf32> to vector<8x32xf32>
    %c0_64 = arith.constant 0 : index
    %c0_65 = arith.constant 0 : index
    %84 = vector.load %arg8[%c0_64, %c0_65] : memref<8x32xf32, #tpu.memory_space<vmem>>, vector<8x32xf32>
    %cst_66 = arith.constant dense<0.000000e+00> : vector<8x32xf32>
    %85 = tpu.matmul %84, %3, %cst_66 {dimension_numbers = #tpu.dot_dimension_numbers<[1], [0], [0], [1], [0, 0, 1, 1], [], []>} : vector<8x32xf32>, vector<32x32xf32>, vector<8x32xf32> -> vector<8x32xf32>
    %86 = arith.addf %83, %85 : vector<8x32xf32>
    %87 = math.tanh %86 : vector<8x32xf32>
    %88 = arith.index_cast %80 : i32 to index
    %c0_67 = arith.constant 0 : index
    %c0_68 = arith.constant 0 : index
    %89 = vector.load %arg3[%88, %c0_67, %c0_68] : memref<4x8x32xf32, #tpu.memory_space<vmem>>, vector<1x8x32xf32>
    %90 = vector.shape_cast %89 : vector<1x8x32xf32> to vector<8x32xf32>
    %c0_69 = arith.constant 0 : index
    %c0_70 = arith.constant 0 : index
    %91 = vector.load %arg9[%c0_69, %c0_70] : memref<8x32xf32, #tpu.memory_space<vmem>>, vector<8x32xf32>
    %cst_71 = arith.constant dense<0.000000e+00> : vector<8x32xf32>
    %92 = tpu.matmul %91, %4, %cst_71 {dimension_numbers = #tpu.dot_dimension_numbers<[1], [0], [0], [1], [0, 0, 1, 1], [], []>} : vector<8x32xf32>, vector<32x32xf32>, vector<8x32xf32> -> vector<8x32xf32>
    %93 = arith.addf %90, %92 : vector<8x32xf32>
    %94 = math.tanh %93 : vector<8x32xf32>
    %c0_72 = arith.constant 0 : index
    %c0_73 = arith.constant 0 : index
    %95 = vector.load %arg8[%c0_72, %c0_73] : memref<8x32xf32, #tpu.memory_space<vmem>>, vector<8x32xf32>
    tpu.vector_store %arg8[%c0_72, %c0_73], %87 {strides = array<i32>} : memref<8x32xf32, #tpu.memory_space<vmem>>, vector<8x32xf32>,
    %c0_74 = arith.constant 0 : index
    %c0_75 = arith.constant 0 : index
    %96 = vector.load %arg9[%c0_74, %c0_75] : memref<8x32xf32, #tpu.memory_space<vmem>>, vector<8x32xf32>
    tpu.vector_store %arg9[%c0_74, %c0_75], %94 {strides = array<i32>} : memref<8x32xf32, #tpu.memory_space<vmem>>, vector<8x32xf32>,
    %97 = arith.index_cast %c3_i32_60 : i32 to index
    %c0_76 = arith.constant 0 : index
    %c0_77 = arith.constant 0 : index
    %98 = vector.load %arg6[%97, %c0_76, %c0_77] : memref<4x8x32xf32, #tpu.memory_space<vmem>>, vector<1x8x32xf32>
    %99 = vector.shape_cast %98 : vector<1x8x32xf32> to vector<8x32xf32>
    %100 = vector.shape_cast %87 : vector<8x32xf32> to vector<1x8x32xf32>
    tpu.vector_store %arg6[%97, %c0_76, %c0_77], %100 {strides = array<i32>} : memref<4x8x32xf32, #tpu.memory_space<vmem>>, vector<1x8x32xf32>,
    %101 = arith.index_cast %80 : i32 to index
    %c0_78 = arith.constant 0 : index
    %c0_79 = arith.constant 0 : index
    %102 = vector.load %arg7[%101, %c0_78, %c0_79] : memref<4x8x32xf32, #tpu.memory_space<vmem>>, vector<1x8x32xf32>
    %103 = vector.shape_cast %102 : vector<1x8x32xf32> to vector<8x32xf32>
    %104 = vector.shape_cast %94 : vector<8x32xf32> to vector<1x8x32xf32>
    tpu.vector_store %arg7[%101, %c0_78, %c0_79], %104 {strides = array<i32>} : memref<4x8x32xf32, #tpu.memory_space<vmem>>, vector<1x8x32xf32>,
    %c4_i32 = arith.constant 4 : i32
    return
  }
  func.func @transform_0(%arg0: i32, %arg1: i32) -> (i32, i32, i32) {
    %c0_i32 = arith.constant 0 : i32
    %c0_i32_0 = arith.constant 0 : i32
    return %arg1, %arg0, %c0_i32 : i32, i32, i32
  }
  func.func @transform_1(%arg0: i32, %arg1: i32) -> (i32, i32, i32) {
    %c1_i32 = arith.constant 1 : i32
    %0 = arith.subi %c1_i32, %arg1 : i32
    %c0_i32 = arith.constant 0 : i32
    %c0_i32_0 = arith.constant 0 : i32
    return %0, %arg0, %c0_i32 : i32, i32, i32
  }
  func.func @transform_2(%arg0: i32, %arg1: i32) -> (i32, i32) {
    %c0_i32 = arith.constant 0 : i32
    %c0_i32_0 = arith.constant 0 : i32
    %c0_i32_1 = arith.constant 0 : i32
    return %c0_i32, %c0_i32_0 : i32, i32
  }
  func.func @transform_3(%arg0: i32, %arg1: i32) -> (i32, i32) {
    %c0_i32 = arith.constant 0 : i32
    %c0_i32_0 = arith.constant 0 : i32
    %c0_i32_1 = arith.constant 0 : i32
    return %c0_i32, %c0_i32_0 : i32, i32
  }
  func.func @transform_4(%arg0: i32, %arg1: i32) -> (i32, i32, i32) {
    %c0_i32 = arith.constant 0 : i32
    %c0_i32_0 = arith.constant 0 : i32
    return %arg1, %arg0, %c0_i32 : i32, i32, i32
  }
  func.func @transform_5(%arg0: i32, %arg1: i32) -> (i32, i32, i32) {
    %c1_i32 = arith.constant 1 : i32
    %0 = arith.subi %c1_i32, %arg1 : i32
    %c0_i32 = arith.constant 0 : i32
    %c0_i32_0 = arith.constant 0 : i32
    return %0, %arg0, %c0_i32 : i32, i32, i32
  }
}

module attributes {stable_mosaic.version = 11 : i64} {
  func.func @_head_scan_kernel(%arg0: i32, %arg1: i32, %arg2: memref<4x8x128xf32, #tpu.memory_space<vmem>>, %arg3: memref<128x128xf32, #tpu.memory_space<vmem>>, %arg4: memref<4x8x128xf32, #tpu.memory_space<vmem>>, %arg5: memref<8x128xf32, #tpu.memory_space<vmem>>) attributes {dimension_semantics = [#tpu.dimension_semantics<parallel>, #tpu.dimension_semantics<arbitrary>], iteration_bounds = array<i64: 1, 2>, scalar_prefetch = 0 : i64, scratch_operands = 1 : i64, tpu.core_type = #tpu.core_type<tc>, window_params = [{transform_indices = @transform_0, window_bounds = array<i64: 4, 8, 128>}, {pipeline_mode = #tpu.pipeline_mode<synchronous>, transform_indices = @transform_1, window_bounds = array<i64: 128, 128>}, {transform_indices = @transform_2, window_bounds = array<i64: 4, 8, 128>}]} {
    %c0_i32 = arith.constant 0 : i32
    %0 = arith.cmpi eq, %arg1, %c0_i32 : i32
    %1 = arith.extui %0 : i1 to i32
    %c0_i32_0 = arith.constant 0 : i32
    %2 = arith.cmpi ne, %1, %c0_i32_0 : i32
    scf.if %2 {
      %cst_38 = arith.constant 0.000000e+00 : f32
      %52 = vector.broadcast %cst_38 : f32 to vector<8x128xf32>
      %c0_39 = arith.constant 0 : index
      %c0_40 = arith.constant 0 : index
      %53 = vector.load %arg5[%c0_39, %c0_40] : memref<8x128xf32, #tpu.memory_space<vmem>>, vector<8x128xf32>
      tpu.vector_store %arg5[%c0_39, %c0_40], %52 {strides = array<i32>} : memref<8x128xf32, #tpu.memory_space<vmem>>, vector<8x128xf32>,
    } else {
    }
    %c0 = arith.constant 0 : index
    %c0_1 = arith.constant 0 : index
    %3 = vector.load %arg3[%c0, %c0_1] : memref<128x128xf32, #tpu.memory_space<vmem>>, vector<128x128xf32>
    %c0_i32_2 = arith.constant 0 : i32
    %4 = arith.index_cast %c0_i32_2 : i32 to index
    %c0_3 = arith.constant 0 : index
    %c0_4 = arith.constant 0 : index
    %5 = vector.load %arg2[%4, %c0_3, %c0_4] : memref<4x8x128xf32, #tpu.memory_space<vmem>>, vector<1x8x128xf32>
    %6 = vector.shape_cast %5 : vector<1x8x128xf32> to vector<8x128xf32>
    %c0_5 = arith.constant 0 : index
    %c0_6 = arith.constant 0 : index
    %7 = vector.load %arg5[%c0_5, %c0_6] : memref<8x128xf32, #tpu.memory_space<vmem>>, vector<8x128xf32>
    %cst = arith.constant dense<0.000000e+00> : vector<8x128xf32>
    %8 = tpu.matmul %7, %3, %cst {dimension_numbers = #tpu.dot_dimension_numbers<[1], [0], [0], [1], [0, 0, 1, 1], [], []>} : vector<8x128xf32>, vector<128x128xf32>, vector<8x128xf32> -> vector<8x128xf32>
    %9 = arith.addf %6, %8 : vector<8x128xf32>
    %10 = math.tanh %9 : vector<8x128xf32>
    %c0_7 = arith.constant 0 : index
    %c0_8 = arith.constant 0 : index
    %11 = vector.load %arg5[%c0_7, %c0_8] : memref<8x128xf32, #tpu.memory_space<vmem>>, vector<8x128xf32>
    tpu.vector_store %arg5[%c0_7, %c0_8], %10 {strides = array<i32>} : memref<8x128xf32, #tpu.memory_space<vmem>>, vector<8x128xf32>,
    %12 = arith.index_cast %c0_i32_2 : i32 to index
    %c0_9 = arith.constant 0 : index
    %c0_10 = arith.constant 0 : index
    %13 = vector.load %arg4[%12, %c0_9, %c0_10] : memref<4x8x128xf32, #tpu.memory_space<vmem>>, vector<1x8x128xf32>
    %14 = vector.shape_cast %13 : vector<1x8x128xf32> to vector<8x128xf32>
    %15 = vector.shape_cast %10 : vector<8x128xf32> to vector<1x8x128xf32>
    tpu.vector_store %arg4[%12, %c0_9, %c0_10], %15 {strides = array<i32>} : memref<4x8x128xf32, #tpu.memory_space<vmem>>, vector<1x8x128xf32>,
    %c1_i32 = arith.constant 1 : i32
    %16 = arith.index_cast %c1_i32 : i32 to index
    %c0_11 = arith.constant 0 : index
    %c0_12 = arith.constant 0 : index
    %17 = vector.load %arg2[%16, %c0_11, %c0_12] : memref<4x8x128xf32, #tpu.memory_space<vmem>>, vector<1x8x128xf32>
    %18 = vector.shape_cast %17 : vector<1x8x128xf32> to vector<8x128xf32>
    %c0_13 = arith.constant 0 : index
    %c0_14 = arith.constant 0 : index
    %19 = vector.load %arg5[%c0_13, %c0_14] : memref<8x128xf32, #tpu.memory_space<vmem>>, vector<8x128xf32>
    %cst_15 = arith.constant dense<0.000000e+00> : vector<8x128xf32>
    %20 = tpu.matmul %19, %3, %cst_15 {dimension_numbers = #tpu.dot_dimension_numbers<[1], [0], [0], [1], [0, 0, 1, 1], [], []>} : vector<8x128xf32>, vector<128x128xf32>, vector<8x128xf32> -> vector<8x128xf32>
    %21 = arith.addf %18, %20 : vector<8x128xf32>
    %22 = math.tanh %21 : vector<8x128xf32>
    %c0_16 = arith.constant 0 : index
    %c0_17 = arith.constant 0 : index
    %23 = vector.load %arg5[%c0_16, %c0_17] : memref<8x128xf32, #tpu.memory_space<vmem>>, vector<8x128xf32>
    tpu.vector_store %arg5[%c0_16, %c0_17], %22 {strides = array<i32>} : memref<8x128xf32, #tpu.memory_space<vmem>>, vector<8x128xf32>,
    %24 = arith.index_cast %c1_i32 : i32 to index
    %c0_18 = arith.constant 0 : index
    %c0_19 = arith.constant 0 : index
    %25 = vector.load %arg4[%24, %c0_18, %c0_19] : memref<4x8x128xf32, #tpu.memory_space<vmem>>, vector<1x8x128xf32>
    %26 = vector.shape_cast %25 : vector<1x8x128xf32> to vector<8x128xf32>
    %27 = vector.shape_cast %22 : vector<8x128xf32> to vector<1x8x128xf32>
    tpu.vector_store %arg4[%24, %c0_18, %c0_19], %27 {strides = array<i32>} : memref<4x8x128xf32, #tpu.memory_space<vmem>>, vector<1x8x128xf32>,
    %c2_i32 = arith.constant 2 : i32
    %28 = arith.index_cast %c2_i32 : i32 to index
    %c0_20 = arith.constant 0 : index
    %c0_21 = arith.constant 0 : index
    %29 = vector.load %arg2[%28, %c0_20, %c0_21] : memref<4x8x128xf32, #tpu.memory_space<vmem>>, vector<1x8x128xf32>
    %30 = vector.shape_cast %29 : vector<1x8x128xf32> to vector<8x128xf32>
    %c0_22 = arith.constant 0 : index
    %c0_23 = arith.constant 0 : index
    %31 = vector.load %arg5[%c0_22, %c0_23] : memref<8x128xf32, #tpu.memory_space<vmem>>, vector<8x128xf32>
    %cst_24 = arith.constant dense<0.000000e+00> : vector<8x128xf32>
    %32 = tpu.matmul %31, %3, %cst_24 {dimension_numbers = #tpu.dot_dimension_numbers<[1], [0], [0], [1], [0, 0, 1, 1], [], []>} : vector<8x128xf32>, vector<128x128xf32>, vector<8x128xf32> -> vector<8x128xf32>
    %33 = arith.addf %30, %32 : vector<8x128xf32>
    %34 = math.tanh %33 : vector<8x128xf32>
    %c0_25 = arith.constant 0 : index
    %c0_26 = arith.constant 0 : index
    %35 = vector.load %arg5[%c0_25, %c0_26] : memref<8x128xf32, #tpu.memory_space<vmem>>, vector<8x128xf32>
    tpu.vector_store %arg5[%c0_25, %c0_26], %34 {strides = array<i32>} : memref<8x128xf32, #tpu.memory_space<vmem>>, vector<8x128xf32>,
    %36 = arith.index_cast %c2_i32 : i32 to index
    %c0_27 = arith.constant 0 : index
    %c0_28 = arith.constant 0 : index
    %37 = vector.load %arg4[%36, %c0_27, %c0_28] : memref<4x8x128xf32, #tpu.memory_space<vmem>>, vector<1x8x128xf32>
    %38 = vector.shape_cast %37 : vector<1x8x128xf32> to vector<8x128xf32>
    %39 = vector.shape_cast %34 : vector<8x128xf32> to vector<1x8x128xf32>
    tpu.vector_store %arg4[%36, %c0_27, %c0_28], %39 {strides = array<i32>} : memref<4x8x128xf32, #tpu.memory_space<vmem>>, vector<1x8x128xf32>,
    %c3_i32 = arith.constant 3 : i32
    %40 = arith.index_cast %c3_i32 : i32 to index
    %c0_29 = arith.constant 0 : index
    %c0_30 = arith.constant 0 : index
    %41 = vector.load %arg2[%40, %c0_29, %c0_30] : memref<4x8x128xf32, #tpu.memory_space<vmem>>, vector<1x8x128xf32>
    %42 = vector.shape_cast %41 : vector<1x8x128xf32> to vector<8x128xf32>
    %c0_31 = arith.constant 0 : index
    %c0_32 = arith.constant 0 : index
    %43 = vector.load %arg5[%c0_31, %c0_32] : memref<8x128xf32, #tpu.memory_space<vmem>>, vector<8x128xf32>
    %cst_33 = arith.constant dense<0.000000e+00> : vector<8x128xf32>
    %44 = tpu.matmul %43, %3, %cst_33 {dimension_numbers = #tpu.dot_dimension_numbers<[1], [0], [0], [1], [0, 0, 1, 1], [], []>} : vector<8x128xf32>, vector<128x128xf32>, vector<8x128xf32> -> vector<8x128xf32>
    %45 = arith.addf %42, %44 : vector<8x128xf32>
    %46 = math.tanh %45 : vector<8x128xf32>
    %c0_34 = arith.constant 0 : index
    %c0_35 = arith.constant 0 : index
    %47 = vector.load %arg5[%c0_34, %c0_35] : memref<8x128xf32, #tpu.memory_space<vmem>>, vector<8x128xf32>
    tpu.vector_store %arg5[%c0_34, %c0_35], %46 {strides = array<i32>} : memref<8x128xf32, #tpu.memory_space<vmem>>, vector<8x128xf32>,
    %48 = arith.index_cast %c3_i32 : i32 to index
    %c0_36 = arith.constant 0 : index
    %c0_37 = arith.constant 0 : index
    %49 = vector.load %arg4[%48, %c0_36, %c0_37] : memref<4x8x128xf32, #tpu.memory_space<vmem>>, vector<1x8x128xf32>
    %50 = vector.shape_cast %49 : vector<1x8x128xf32> to vector<8x128xf32>
    %51 = vector.shape_cast %46 : vector<8x128xf32> to vector<1x8x128xf32>
    tpu.vector_store %arg4[%48, %c0_36, %c0_37], %51 {strides = array<i32>} : memref<4x8x128xf32, #tpu.memory_space<vmem>>, vector<1x8x128xf32>,
    %c4_i32 = arith.constant 4 : i32
    return
  }
  func.func @transform_0(%arg0: i32, %arg1: i32) -> (i32, i32, i32) {
    %c0_i32 = arith.constant 0 : i32
    %c0_i32_0 = arith.constant 0 : i32
    return %arg1, %arg0, %c0_i32 : i32, i32, i32
  }
  func.func @transform_1(%arg0: i32, %arg1: i32) -> (i32, i32) {
    %c0_i32 = arith.constant 0 : i32
    %c0_i32_0 = arith.constant 0 : i32
    %c0_i32_1 = arith.constant 0 : i32
    return %c0_i32, %c0_i32_0 : i32, i32
  }
  func.func @transform_2(%arg0: i32, %arg1: i32) -> (i32, i32, i32) {
    %c0_i32 = arith.constant 0 : i32
    %c0_i32_0 = arith.constant 0 : i32
    return %arg1, %arg0, %c0_i32 : i32, i32, i32
  }
}

</mosaic_0001>

<bundles_post_ra>
// kernel: forward.5
= control target key start
LH: loop header
LB: loop body
LE: loop exit
PB: predicated region body
PF: predicated region fallthrough
CT: control target
= control target key end

     0   :  { %s890_s9 = smov 0   ;;  %s892_s10 = smov 0   ;;  %s1151_s0 = inlined_call_operand.vmem [shape: f32[8,8,128], index: 0, kind: input, shape index: {}]   ;;  %s1152_s1 = inlined_call_operand.vmem [shape: f32[128,128], index: 1, kind: input, shape index: {}]   ;;  %s1153_s2 = inlined_call_operand.vmem [shape: f32[8,8,128], index: 2, kind: output, shape index: {}]  }
   0x1   :  { %s894_s11 = smov 0  }
   0x2 LB: > { %s21_s12 = sadd.s32 1, %s866_s10  ;;  %p591_p0 = scmp.ge.s32.totalorder %s870_s11, 1  ;;  %s870_s11 = sphi %s894_s11, %s12_s11   ;;  %s866_s10 = sphi %s892_s10, %s1155_s10   ;;  %s862_s9 = sphi %s890_s9, %s1154_s9  }
   0x3   : > { %p22_p1 = scmp.ge.s32.totalorder %s21_s12, 2  ;;  %p132_p2 = scmp.lt.s32.totalorder %s870_s11, 3 }
   0x5   : > { %s1157_s12 = smov (%p22_p1, %s21_s12), 0  ;;  %p133_p3 = pnand %p591_p0, %p132_p2 }
   0x6   : > { %s592_s13 = sshll.u32 (!%p133_p3), %s862_s9, 2  ;;  %p596_p5 = scmp.ne.s32.totalorder (!%p133_p3), %s862_s9, 0 }
   0x7   : > { %136 = sbr.rel (%p133_p3) target bundleno = 889 (0x379), region = 28  ;;  %p161_p4 = scmp.lt.s32.totalorder (!%p133_p3), %s592_s13, 7 }
   0xc   : > { %s1159_s13 = smov (!%p161_p4, %s592_s13), 7  ;;  %181 = sbr.rel (%p596_p5) target bundleno = 19 (0x13), region = 32 }
   0xd   : > { %s593_s14 = sshll.u32 %s1159_s13, 3 }
   0xe   : > { %s911_s17 = scalar_lea.vmem %s1151_s0, %s593_s14  ;;  %s916_s20 = scalar_lea.vmem %s1153_s2, %s593_s14 }
  0x11   : > { %v872_v0 = vmov 0.0  }
  0x12   : > { %182 = vst [vmem:[#allocation2] sm:$0xff] %v872_v0 }
  0x13 PF: > { %v921_v1 = vld [vmem:[%s1152_s1 + $0x78] sm:$0xff]  ;;  %v873_v2 = vmov 0.0   ;;  %v927_v3 = vld [vmem:[%s1152_s1 + $0x70] sm:$0xff]  ;;  %vm874_vm0 = vmmov 0   ;;  %v937_v4 = vld [vmem:[%s1152_s1 + $0x68] sm:$0xff] }
  0x14   : > { %673 = vmatprep.subr.mxu0 %v873_v2  ;;  %705 = vmatprep.mubr.msk.f32.mxu0 %vm874_vm0, %v873_v2  ;;  %v946_v5 = vld [vmem:[%s1152_s1 + $0x60] sm:$0xff]  ;;  %v955_v6 = vld [vmem:[%s1152_s1 + $0x58] sm:$0xff]  ;;  %v964_v7 = vld [vmem:[%s1152_s1 + $0x50] sm:$0xff] }
  0x15   : > { %674 = vmatpush3.msra.mxu0 %v921_v1  ;;  %708 = vmatprep.subr.mxu1 %v873_v2  ;;  %v973_v8 = vld [vmem:[%s1152_s1 + $0x48] sm:$0xff]  ;;  %v982_v9 = vld [vmem:[%s1152_s1 + $0x40] sm:$0xff]  ;;  %v991_v10 = vld [vmem:[%s1152_s1 + $0x38] sm:$0xff] }
  0x16   : > { %675 = vmatprep.subr.mxu0 %v873_v2  ;;  %709 = vmatpush3.msra.mxu1 %v921_v1  ;;  %v1000_v11 = vld [vmem:[%s1152_s1 + $0x30] sm:$0xff]  ;;  %v1009_v12 = vld [vmem:[%s1152_s1 + $0x28] sm:$0xff]  ;;  %v1018_v13 = vld [vmem:[%s1152_s1 + $0x20] sm:$0xff] }
  0x17   : > { %676 = vmatpush3.msra.mxu0 %v927_v3  ;;  %710 = vmatprep.subr.mxu1 %v873_v2  ;;  %v1027_v14 = vld [vmem:[%s1152_s1 + $0x18] sm:$0xff]  ;;  %v1036_v15 = vld [vmem:[%s1152_s1 + $0x10] sm:$0xff]  ;;  %v1045_v16 = vld [vmem:[%s1152_s1 + $0x8] sm:$0xff] }
  0x18   : > { %677 = vmatprep.subr.mxu0 %v873_v2  ;;  %711 = vmatpush3.msra.mxu1 %v927_v3  ;;  %v1054_v17 = vld [vmem:[%s1152_s1] sm:$0xff]  ;;  %v597_v24 = vld [vmem:[%s911_s17 + $0x8] sm:$0xff]  ;;  %v599_v29 = vld [vmem:[%s911_s17 + $0x10] sm:$0xff] }
  0x19   : > { %678 = vmatpush3.msra.mxu0 %v937_v4  ;;  %712 = vmatprep.subr.mxu1 %v873_v2  ;;  %v200_v18 = vld [vmem:[#allocation2] sm:$0xff]  ;;  %v601_v34 = vld [vmem:[%s911_s17 + $0x18] sm:$0xff] }
  0x1a   : > { %679 = vmatprep.subr.mxu0 %v873_v2  ;;  %713 = vmatpush3.msra.mxu1 %v937_v4  ;;  %v199_v19 = vld [vmem:[%s911_s17] sm:$0xff] }
  0x1b   : > { %680 = vmatpush3.msra.mxu0 %v946_v5  ;;  %714 = vmatprep.subr.mxu1 %v873_v2 }
  0x1c   : > { %681 = vmatprep.subr.mxu0 %v873_v2  ;;  %715 = vmatpush3.msra.mxu1 %v946_v5 }
  0x1d   : > { %682 = vmatpush3.msra.mxu0 %v955_v6  ;;  %716 = vmatprep.subr.mxu1 %v873_v2 }
  0x1e   : > { %683 = vmatprep.subr.mxu0 %v873_v2  ;;  %717 = vmatpush3.msra.mxu1 %v955_v6 }
  0x1f   : > { %684 = vmatpush3.msra.mxu0 %v964_v7  ;;  %718 = vmatprep.subr.mxu1 %v873_v2 }
  0x20   : > { %685 = vmatprep.subr.mxu0 %v873_v2  ;;  %719 = vmatpush3.msra.mxu1 %v964_v7 }
  0x21   : > { %686 = vmatpush3.msra.mxu0 %v973_v8  ;;  %720 = vmatprep.subr.mxu1 %v873_v2 }
  0x22   : > { %687 = vmatprep.subr.mxu0 %v873_v2  ;;  %721 = vmatpush3.msra.mxu1 %v973_v8 }
  0x23   : > { %688 = vmatpush3.msra.mxu0 %v982_v9  ;;  %722 = vmatprep.subr.mxu1 %v873_v2 }
  0x24   : > { %689 = vmatprep.subr.mxu0 %v873_v2  ;;  %723 = vmatpush3.msra.mxu1 %v982_v9 }
  0x25   : > { %690 = vmatpush3.msra.mxu0 %v991_v10  ;;  %724 = vmatprep.subr.mxu1 %v873_v2 }
  0x26   : > { %691 = vmatprep.subr.mxu0 %v873_v2  ;;  %725 = vmatpush3.msra.mxu1 %v991_v10 }
  0x27   : > { %692 = vmatpush3.msra.mxu0 %v1000_v11  ;;  %726 = vmatprep.subr.mxu1 %v873_v2 }
  0x28   : > { %693 = vmatprep.subr.mxu0 %v873_v2  ;;  %727 = vmatpush3.msra.mxu1 %v1000_v11 }
  0x29   : > { %694 = vmatpush3.msra.mxu0 %v1009_v12  ;;  %728 = vmatprep.subr.mxu1 %v873_v2 }
  0x2a   : > { %695 = vmatprep.subr.mxu0 %v873_v2  ;;  %729 = vmatpush3.msra.mxu1 %v1009_v12 }
  0x2b   : > { %696 = vmatpush3.msra.mxu0 %v1018_v13  ;;  %730 = vmatprep.subr.mxu1 %v873_v2 }
  0x2c   : > { %697 = vmatprep.subr.mxu0 %v873_v2  ;;  %731 = vmatpush3.msra.mxu1 %v1018_v13 }
  0x2d   : > { %698 = vmatpush3.msra.mxu0 %v1027_v14  ;;  %732 = vmatprep.subr.mxu1 %v873_v2 }
  0x2e   : > { %699 = vmatprep.subr.mxu0 %v873_v2  ;;  %733 = vmatpush3.msra.mxu1 %v1027_v14 }
  0x2f   : > { %700 = vmatpush3.msra.mxu0 %v1036_v15  ;;  %734 = vmatprep.subr.mxu1 %v873_v2 }
  0x30   : > { %701 = vmatprep.subr.mxu0 %v873_v2  ;;  %735 = vmatpush3.msra.mxu1 %v1036_v15 }
  0x31   : > { %702 = vmatpush3.msra.mxu0 %v1045_v16  ;;  %736 = vmatprep.subr.mxu1 %v873_v2 }
  0x32   : > { %703 = vmatprep.subr.mxu0 %v873_v2  ;;  %737 = vmatpush3.msra.mxu1 %v1045_v16 }
  0x33   : > { %704 = vmatpush3.msra.mxu0 %v1054_v17  ;;  %738 = vmatprep.subr.mxu1 %v873_v2 }
  0x34   : > { %706 = vmatmul.mubr.f32.vlgmr.msra.gmra.mxu0 %v200_v18  ;;  %739 = vmatpush3.msra.mxu1 %v1054_v17 }
  0x35   : > { %740 = vmatprep.mubr.msk.f32.mxu1 %vm874_vm0, %v873_v2  ;;  %743 = vmatprep.subr.mxu0 %v873_v2 }
  0x36   : > { %744 = vmatpush3.msra.mxu0 %v921_v1  ;;  %775 = vmatprep.mubr.msk.f32.mxu0 %vm874_vm0, %v873_v2 }
  0x37   : > { %745 = vmatprep.subr.mxu0 %v873_v2  ;;  %778 = vmatprep.subr.mxu1 %v873_v2 }
  0x38   : > { %746 = vmatpush3.msra.mxu0 %v927_v3 }
  0x39   : > { %747 = vmatprep.subr.mxu0 %v873_v2 }
  0x3a   : > { %748 = vmatpush3.msra.mxu0 %v937_v4 }
  0x3b   : > { %749 = vmatprep.subr.mxu0 %v873_v2 }
  0x3c   : > { %750 = vmatpush3.msra.mxu0 %v946_v5 }
  0x3d   : > { %751 = vmatprep.subr.mxu0 %v873_v2 }
  0x3e   : > { %752 = vmatpush3.msra.mxu0 %v955_v6 }
  0x3f   : > { %753 = vmatprep.subr.mxu0 %v873_v2 }
  0x40   : > { %754 = vmatpush3.msra.mxu0 %v964_v7 }
  0x41   : > { %755 = vmatprep.subr.mxu0 %v873_v2 }
  0x42   : > { %756 = vmatpush3.msra.mxu0 %v973_v8 }
  0x43   : > { %757 = vmatprep.subr.mxu0 %v873_v2 }
  0x44   : > { %758 = vmatpush3.msra.mxu0 %v982_v9 }
  0x45   : > { %759 = vmatprep.subr.mxu0 %v873_v2 }
  0x46   : > { %760 = vmatpush3.msra.mxu0 %v991_v10 }
  0x47   : > { %761 = vmatprep.subr.mxu0 %v873_v2 }
  0x48   : > { %762 = vmatpush3.msra.mxu0 %v1000_v11 }
  0x49   : > { %763 = vmatprep.subr.mxu0 %v873_v2 }
  0x4a   : > { %764 = vmatpush3.msra.mxu0 %v1009_v12 }
  0x4b   : > { %765 = vmatprep.subr.mxu0 %v873_v2 }
  0x4c   : > { %766 = vmatpush3.msra.mxu0 %v1018_v13 }
  0x4d   : > { %767 = vmatprep.subr.mxu0 %v873_v2 }
  0x4e   : > { %768 = vmatpush3.msra.mxu0 %v1027_v14 }
  0x4f   : > { %769 = vmatprep.subr.mxu0 %v873_v2 }
  0x50   : > { %770 = vmatpush3.msra.mxu0 %v1036_v15 }
  0x51   : > { %771 = vmatprep.subr.mxu0 %v873_v2 }
  0x52   : > { %772 = vmatpush3.msra.mxu0 %v1045_v16 }
  0x53   : > { %773 = vmatprep.subr.mxu0 %v873_v2 }
  0x54   : > { %774 = vmatpush3.msra.mxu0 %v1054_v17 }
  0xf4   : > { %v267_v20 = vpop.f32.mrf.mxu0 }
  0xf5   : > { %v271_v21 = vadd.f32 %v267_v20, %v199_v19 }
  0xf6   : > { %v707_v22 = vpop.f32.mrf.mxu0 }
  0xf7   : > { %840 = vtanh.f32 %v271_v21 }
 0x104   : > { %v841_v23 = vpop.eup %840 }
 0x105   : > { %274 = vst [vmem:[%s916_s20] sm:$0xff] %v841_v23  ;;  %741 = vmatmul.mubr.f32.vlgmr.msra.gmra.mxu1 %v841_v23 }
 0x106   : > { %779 = vmatpush3.msra.mxu1 %v921_v1  ;;  %810 = vmatprep.mubr.msk.f32.mxu1 %vm874_vm0, %v873_v2 }
 0x107   : > { %780 = vmatprep.subr.mxu1 %v873_v2 }
 0x108   : > { %781 = vmatpush3.msra.mxu1 %v927_v3 }
 0x109   : > { %782 = vmatprep.subr.mxu1 %v873_v2 }
 0x10a   : > { %783 = vmatpush3.msra.mxu1 %v937_v4 }
 0x10b   : > { %784 = vmatprep.subr.mxu1 %v873_v2 }
 0x10c   : > { %785 = vmatpush3.msra.mxu1 %v946_v5 }
 0x10d   : > { %786 = vmatprep.subr.mxu1 %v873_v2 }
 0x10e   : > { %787 = vmatpush3.msra.mxu1 %v955_v6 }
 0x10f   : > { %788 = vmatprep.subr.mxu1 %v873_v2 }
 0x110   : > { %789 = vmatpush3.msra.mxu1 %v964_v7 }
 0x111   : > { %790 = vmatprep.subr.mxu1 %v873_v2 }
 0x112   : > { %791 = vmatpush3.msra.mxu1 %v973_v8 }
 0x113   : > { %792 = vmatprep.subr.mxu1 %v873_v2 }
 0x114   : > { %793 = vmatpush3.msra.mxu1 %v982_v9 }
 0x115   : > { %794 = vmatprep.subr.mxu1 %v873_v2 }
 0x116   : > { %795 = vmatpush3.msra.mxu1 %v991_v10 }
 0x117   : > { %796 = vmatprep.subr.mxu1 %v873_v2 }
 0x118   : > { %797 = vmatpush3.msra.mxu1 %v1000_v11 }
 0x119   : > { %798 = vmatprep.subr.mxu1 %v873_v2 }
 0x11a   : > { %799 = vmatpush3.msra.mxu1 %v1009_v12 }
 0x11b   : > { %800 = vmatprep.subr.mxu1 %v873_v2 }
 0x11c   : > { %801 = vmatpush3.msra.mxu1 %v1018_v13 }
 0x11d   : > { %802 = vmatprep.subr.mxu1 %v873_v2 }
 0x11e   : > { %803 = vmatpush3.msra.mxu1 %v1027_v14 }
 0x11f   : > { %804 = vmatprep.subr.mxu1 %v873_v2 }
 0x120   : > { %805 = vmatpush3.msra.mxu1 %v1036_v15 }
 0x121   : > { %806 = vmatprep.subr.mxu1 %v873_v2 }
 0x122   : > { %807 = vmatpush3.msra.mxu1 %v1045_v16 }
 0x123   : > { %808 = vmatprep.subr.mxu1 %v873_v2 }
 0x124   : > { %809 = vmatpush3.msra.mxu1 %v1054_v17 }
 0x1c5   : > { %v344_v25 = vpop.f32.mrf.mxu1 }
 0x1c6   : > { %v348_v26 = vadd.f32 %v597_v24, %v344_v25 }
 0x1c7   : > { %v742_v27 = vpop.f32.mrf.mxu1 }
 0x1c8   : > { %842 = vtanh.f32 %v348_v26 }
 0x1d5   : > { %v843_v28 = vpop.eup %842 }
 0x1d6   : > { %598 = vst [vmem:[%s916_s20 + $0x8] sm:$0xff] %v843_v28  ;;  %776 = vmatmul.mubr.f32.vlgmr.msra.gmra.mxu0 %v843_v28 }
 0x296   : > { %v422_v30 = vpop.f32.mrf.mxu0 }
 0x297   : > { %v426_v31 = vadd.f32 %v599_v29, %v422_v30 }
 0x298   : > { %v777_v32 = vpop.f32.mrf.mxu0 }
 0x299   : > { %844 = vtanh.f32 %v426_v31 }
 0x2a6   : > { %v845_v33 = vpop.eup %844 }
 0x2a7   : > { %600 = vst [vmem:[%s916_s20 + $0x10] sm:$0xff] %v845_v33  ;;  %811 = vmatmul.mubr.f32.vlgmr.msra.gmra.mxu1 %v845_v33 }
 0x367   : > { %v500_v35 = vpop.f32.mrf.mxu1 }
 0x368   : > { %v504_v36 = vadd.f32 %v601_v34, %v500_v35 }
 0x369   : > { %v812_v37 = vpop.f32.mrf.mxu1 }
 0x36a   : > { %846 = vtanh.f32 %v504_v36 }
 0x377   : > { %v847_v38 = vpop.eup %846 }
 0x378   : > { %506 = vst [vmem:[#allocation2] sm:$0xff] %v847_v38  ;;  %602 = vst [vmem:[%s916_s20 + $0x18] sm:$0xff] %v847_v38 }
 0x379 PF: > { %s12_s11 = sadd.s32 1, %s870_s11   ;;  %s1154_s9 = smov %s866_s10 }
 0x37a   : > { %p9_p6 = scmp.ge.s32.totalorder %s12_s11, 4   ;;  %s1155_s10 = smov %s1157_s12 }
 0x37c   :  { %11 = sbr.rel (!%p9_p6) target bundleno = 2 (0x2), region = 68 }

// kernel: forward.3
= control target key start
LH: loop header
LB: loop body
LE: loop exit
PB: predicated region body
PF: predicated region fallthrough
CT: control target
= control target key end

     0   :  { %s1390_s18 = smov 0   ;;  %s1392_s19 = smov 0   ;;  %s1597_s0 = inlined_call_operand.vmem [shape: f32[8,8,32], index: 0, kind: input, shape index: {}]   ;;  %s1598_s1 = inlined_call_operand.vmem [shape: f32[8,8,32], index: 1, kind: input, shape index: {}]   ;;  %s1599_s2 = inlined_call_operand.vmem [shape: f32[32,32], index: 2, kind: input, shape index: {}]   ;;  %s1600_s3 = inlined_call_operand.vmem [shape: f32[32,32], index: 3, kind: input, shape index: {}]   ;;  %s1601_s4 = inlined_call_operand.vmem [shape: f32[8,8,32], index: 4, kind: output, shape index: {0}]   ;;  %s1602_s5 = inlined_call_operand.vmem [shape: f32[8,8,32], index: 5, kind: output, shape index: {1}]  }
   0x1   :  { %s1394_s20 = smov 0  }
   0x2 LB: > { %s25_s21 = sadd.s32 1, %s1351_s19  ;;  %p1130_p0 = scmp.ge.s32.totalorder %s1355_s20, 1  ;;  %s1355_s20 = sphi %s1394_s20, %s16_s20   ;;  %s1351_s19 = sphi %s1392_s19, %s1604_s19   ;;  %s1347_s18 = sphi %s1390_s18, %s1603_s18  }
   0x3   : > { %p26_p1 = scmp.ge.s32.totalorder %s25_s21, 2  ;;  %p234_p2 = scmp.lt.s32.totalorder %s1355_s20, 3 }
   0x5   : > { %s1606_s21 = smov (%p26_p1, %s25_s21), 0  ;;  %p235_p3 = pnand %p1130_p0, %p234_p2 }
   0x6   : > { %s1131_s22 = sshll.u32 (!%p235_p3), %s1347_s18, 2  ;;  %s295_s23 = ssub.s32 (!%p235_p3), 1, %s1347_s18 }
   0x7   : > { %238 = sbr.rel (%p235_p3) target bundleno = 895 (0x37f), region = 36  ;;  %p287_p4 = scmp.lt.s32.totalorder (!%p235_p3), %s1131_s22, 7 }
   0x8   : > { %s1133_s24 = sshll.u32 (!%p235_p3), %s295_s23, 2  ;;  %p1139_p6 = scmp.ne.s32.totalorder (!%p235_p3), %s1347_s18, 0 }
   0x9   : > { %p297_p5 = scmp.lt.s32.totalorder (!%p235_p3), %s1133_s24, 7 }
   0xc   : > { %s1608_s22 = smov (!%p287_p4, %s1131_s22), 7  ;;  %s1610_s24 = smov (!%p297_p5, %s1133_s24), 7 }
   0xd   : > { %s1132_s25 = sshll.u32 %s1608_s22, 3  ;;  %s1134_s29 = sshll.u32 %s1610_s24, 3 }
   0xe   : > { %s1411_s28 = scalar_lea.vmem %s1597_s0, %s1132_s25  ;;  %s1416_s7 = scalar_lea.vmem %s1598_s1, %s1134_s29 }
   0xf   : > { %s1421_s10 = scalar_lea.vmem %s1601_s4, %s1132_s25  ;;  %s1426_s13 = scalar_lea.vmem %s1602_s5, %s1134_s29 }
  0x10   : > { %329 = sbr.rel (%p1139_p6) target bundleno = 23 (0x17), region = 40 }
  0x15   : > { %vm330_vm0 = vcmask 261120   ;;  %v1357_v0 = vmov 0.0  }
  0x16   : > { %331 = vst.msk [vmem:[#allocation2] sm:$0xff] %vm330_vm0, %v1357_v0  ;;  %332 = vst.msk [vmem:[#allocation3] sm:$0xff] %vm330_vm0, %v1357_v0 }
  0x17 PF: > { %v1431_v1 = vld [vmem:[%s1599_s2 + $0x18] sm:$0xff]  ;;  %v1358_v3 = vmov 0.0   ;;  %v1443_v4 = vld [vmem:[%s1599_s2 + $0x10] sm:$0xff]  ;;  %v1457_v6 = vld [vmem:[%s1599_s2 + $0x8] sm:$0xff]  ;;  %vm343_vm1 = vcmask 261120   ;;  %vm1359_vm2 = vmmov 0  }
  0x18   : > { %v1436_v2 = vld [vmem:[%s1600_s3 + $0x18] sm:$0xff]  ;;  %1202 = vmatprep.subr.mxu0 %v1358_v3  ;;  %1213 = vmatprep.subr.mxu1 %v1358_v3  ;;  %v1448_v5 = vld [vmem:[%s1600_s3 + $0x10] sm:$0xff]  ;;  %v1462_v7 = vld [vmem:[%s1600_s3 + $0x8] sm:$0xff] }
  0x19   : > { %1203 = vmatpush3.msra.mxu0 %v1431_v1  ;;  %1214 = vmatpush3.msra.mxu1 %v1436_v2  ;;  %v1471_v8 = vld [vmem:[%s1599_s2] sm:$0xff]  ;;  %v1141_v13 = vld [vmem:[%s1416_s7 + $0x18] sm:$0xff]  ;;  %v1144_v24 = vld [vmem:[%s1411_s28 + $0x8] sm:$0xff] }
  0x1a   : > { %1204 = vmatprep.subr.mxu0 %v1358_v3  ;;  %1215 = vmatprep.subr.mxu1 %v1358_v3  ;;  %v1478_v9 = vld [vmem:[%s1600_s3] sm:$0xff]  ;;  %v1146_v25 = vld [vmem:[%s1416_s7 + $0x10] sm:$0xff]  ;;  %v1152_v37 = vld [vmem:[%s1416_s7 + $0x8] sm:$0xff] }
  0x1b   : > { %1205 = vmatpush3.msra.mxu0 %v1443_v4  ;;  %1216 = vmatpush3.msra.mxu1 %v1448_v5  ;;  %v341_v12 = vld [vmem:[%s1411_s28] sm:$0xff]  ;;  %v1150_v36 = vld [vmem:[%s1411_s28 + $0x10] sm:$0xff]  ;;  %v1156_v48 = vld [vmem:[%s1411_s28 + $0x18] sm:$0xff] }
  0x1c   : > { %1206 = vmatprep.subr.mxu0 %v1358_v3  ;;  %1217 = vmatprep.subr.mxu1 %v1358_v3  ;;  %v904_v49 = vld [vmem:[%s1416_s7] sm:$0xff] }
  0x1d   : > { %1207 = vmatpush3.msra.mxu0 %v1457_v6  ;;  %1218 = vmatpush3.msra.mxu1 %v1462_v7  ;;  %v342_v10 = vld [vmem:[#allocation2] sm:$0xff]  ;;  %v421_v11 = vld [vmem:[#allocation3] sm:$0xff] }
  0x1e   : > { %1208 = vmatprep.subr.mxu0 %v1358_v3  ;;  %1219 = vmatprep.subr.mxu1 %v1358_v3 }
  0x1f   : > { %1209 = vmatpush3.msra.mxu0 %v1471_v8  ;;  %1210 = vmatprep.mubr.msk.f32.mxu0 %vm1359_vm2, %v1358_v3 }
  0x20   : > { %1220 = vmatpush3.msra.mxu1 %v1478_v9  ;;  %1221 = vmatprep.mubr.msk.f32.mxu1 %vm1359_vm2, %v1358_v3 }
  0x21   : > { %1211 = vmatmul.mubr.msk.f32.vlgmr.msra.gmra.mxu0 %vm343_vm1, %v342_v10  ;;  %1222 = vmatmul.mubr.msk.f32.vlgmr.msra.gmra.mxu1 %vm343_vm1, %v421_v11 }
  0x22   : > { %1224 = vmatprep.subr.mxu0 %v1358_v3  ;;  %1235 = vmatprep.subr.mxu1 %v1358_v3 }
  0x23   : > { %1225 = vmatpush3.msra.mxu0 %v1431_v1  ;;  %1236 = vmatpush3.msra.mxu1 %v1436_v2 }
  0x24   : > { %1226 = vmatprep.subr.mxu0 %v1358_v3  ;;  %1237 = vmatprep.subr.mxu1 %v1358_v3 }
  0x25   : > { %1227 = vmatpush3.msra.mxu0 %v1443_v4  ;;  %1238 = vmatpush3.msra.mxu1 %v1448_v5 }
  0x26   : > { %1228 = vmatprep.subr.mxu0 %v1358_v3  ;;  %1239 = vmatprep.subr.mxu1 %v1358_v3 }
  0x27   : > { %1229 = vmatpush3.msra.mxu0 %v1457_v6  ;;  %1240 = vmatpush3.msra.mxu1 %v1462_v7 }
  0x28   : > { %1230 = vmatprep.subr.mxu0 %v1358_v3  ;;  %1241 = vmatprep.subr.mxu1 %v1358_v3 }
  0x29   : > { %1231 = vmatpush3.msra.mxu0 %v1471_v8  ;;  %1232 = vmatprep.mubr.msk.f32.mxu0 %vm1359_vm2, %v1358_v3 }
  0x2a   : > { %1242 = vmatpush3.msra.mxu1 %v1478_v9  ;;  %1243 = vmatprep.mubr.msk.f32.mxu1 %vm1359_vm2, %v1358_v3 }
  0x2b   : > { %1246 = vmatprep.subr.mxu0 %v1358_v3  ;;  %1257 = vmatprep.subr.mxu1 %v1358_v3 }
  0xe1   : > { %v413_v14 = vpop.f32.mrf.mxu0  ;;  %v491_v15 = vpop.f32.mrf.mxu1 }
  0xe2   : > { %v417_v16 = vadd.f32 %v413_v14, %v341_v12  ;;  %v495_v17 = vadd.f32 %v1141_v13, %v491_v15 }
  0xe3   : > { %v1212_v18 = vpop.f32.mrf.mxu0  ;;  %v1223_v19 = vpop.f32.mrf.mxu1 }
  0xe4   : > { %1317 = vtanh.f32 %v417_v16 }
  0xe5   : > { %1319 = vtanh.f32 %v495_v17 }
  0xf1   : > { %v1318_v20 = vpop.eup %1317 }
  0xf2   : > { %v1320_v21 = vpop.eup %1319  ;;  %497 = vst.msk [vmem:[#allocation2] sm:$0xff] %vm343_vm1, %v1318_v20  ;;  %499 = vst.msk [vmem:[%s1421_s10] sm:$0xff] %vm343_vm1, %v1318_v20 }
  0xf3   : > { %498 = vst.msk [vmem:[#allocation3] sm:$0xff] %vm343_vm1, %v1320_v21  ;;  %1143 = vst.msk [vmem:[%s1426_s13 + $0x18] sm:$0xff] %vm343_vm1, %v1320_v21 }
  0xf9   : > { %v504_v22 = vld [vmem:[#allocation2] sm:$0xff] }
  0xfa   : > { %1233 = vmatmul.mubr.msk.f32.vlgmr.msra.gmra.mxu0 %vm343_vm1, %v504_v22  ;;  %v582_v23 = vld [vmem:[#allocation3] sm:$0xff] }
  0xfb   : > { %1244 = vmatmul.mubr.msk.f32.vlgmr.msra.gmra.mxu1 %vm343_vm1, %v582_v23  ;;  %1247 = vmatpush3.msra.mxu0 %v1431_v1 }
  0xfc   : > { %1258 = vmatpush3.msra.mxu1 %v1436_v2  ;;  %1248 = vmatprep.subr.mxu0 %v1358_v3 }
  0xfd   : > { %1259 = vmatprep.subr.mxu1 %v1358_v3  ;;  %1249 = vmatpush3.msra.mxu0 %v1443_v4 }
  0xfe   : > { %1260 = vmatpush3.msra.mxu1 %v1448_v5  ;;  %1250 = vmatprep.subr.mxu0 %v1358_v3 }
  0xff   : > { %1261 = vmatprep.subr.mxu1 %v1358_v3  ;;  %1251 = vmatpush3.msra.mxu0 %v1457_v6 }
 0x100   : > { %1262 = vmatpush3.msra.mxu1 %v1462_v7  ;;  %1252 = vmatprep.subr.mxu0 %v1358_v3 }
 0x101   : > { %1263 = vmatprep.subr.mxu1 %v1358_v3  ;;  %1253 = vmatpush3.msra.mxu0 %v1471_v8 }
 0x102   : > { %1254 = vmatprep.mubr.msk.f32.mxu0 %vm1359_vm2, %v1358_v3  ;;  %1264 = vmatpush3.msra.mxu1 %v1478_v9 }
 0x103   : > { %1265 = vmatprep.mubr.msk.f32.mxu1 %vm1359_vm2, %v1358_v3  ;;  %1268 = vmatprep.subr.mxu0 %v1358_v3 }
 0x104   : > { %1279 = vmatprep.subr.mxu1 %v1358_v3 }
 0x1ba   : > { %v574_v26 = vpop.f32.mrf.mxu0 }
 0x1bb   : > { %v578_v27 = vadd.f32 %v1144_v24, %v574_v26  ;;  %v652_v28 = vpop.f32.mrf.mxu1 }
 0x1bc   : > { %v656_v29 = vadd.f32 %v1146_v25, %v652_v28  ;;  %v1234_v30 = vpop.f32.mrf.mxu0 }
 0x1bd   : > { %1321 = vtanh.f32 %v578_v27  ;;  %v1245_v31 = vpop.f32.mrf.mxu1 }
 0x1be   : > { %1323 = vtanh.f32 %v656_v29 }
 0x1ca   : > { %v1322_v32 = vpop.eup %1321 }
 0x1cb   : > { %v1324_v33 = vpop.eup %1323  ;;  %1148 = vst.msk [vmem:[%s1421_s10 + $0x8] sm:$0xff] %vm343_vm1, %v1322_v32  ;;  %658 = vst.msk [vmem:[#allocation2] sm:$0xff] %vm343_vm1, %v1322_v32 }
 0x1cc   : > { %1149 = vst.msk [vmem:[%s1426_s13 + $0x10] sm:$0xff] %vm343_vm1, %v1324_v33  ;;  %659 = vst.msk [vmem:[#allocation3] sm:$0xff] %vm343_vm1, %v1324_v33 }
 0x1d2   : > { %v666_v34 = vld [vmem:[#allocation2] sm:$0xff] }
 0x1d3   : > { %1255 = vmatmul.mubr.msk.f32.vlgmr.msra.gmra.mxu0 %vm343_vm1, %v666_v34  ;;  %v744_v35 = vld [vmem:[#allocation3] sm:$0xff] }
 0x1d4   : > { %1266 = vmatmul.mubr.msk.f32.vlgmr.msra.gmra.mxu1 %vm343_vm1, %v744_v35  ;;  %1269 = vmatpush3.msra.mxu0 %v1431_v1 }
 0x1d5   : > { %1280 = vmatpush3.msra.mxu1 %v1436_v2  ;;  %1270 = vmatprep.subr.mxu0 %v1358_v3 }
 0x1d6   : > { %1281 = vmatprep.subr.mxu1 %v1358_v3  ;;  %1271 = vmatpush3.msra.mxu0 %v1443_v4 }
 0x1d7   : > { %1282 = vmatpush3.msra.mxu1 %v1448_v5  ;;  %1272 = vmatprep.subr.mxu0 %v1358_v3 }
 0x1d8   : > { %1283 = vmatprep.subr.mxu1 %v1358_v3  ;;  %1273 = vmatpush3.msra.mxu0 %v1457_v6 }
 0x1d9   : > { %1284 = vmatpush3.msra.mxu1 %v1462_v7  ;;  %1274 = vmatprep.subr.mxu0 %v1358_v3 }
 0x1da   : > { %1285 = vmatprep.subr.mxu1 %v1358_v3  ;;  %1275 = vmatpush3.msra.mxu0 %v1471_v8 }
 0x1db   : > { %1276 = vmatprep.mubr.msk.f32.mxu0 %vm1359_vm2, %v1358_v3  ;;  %1286 = vmatpush3.msra.mxu1 %v1478_v9 }
 0x1dc   : > { %1287 = vmatprep.mubr.msk.f32.mxu1 %vm1359_vm2, %v1358_v3 }
 0x293   : > { %v736_v38 = vpop.f32.mrf.mxu0 }
 0x294   : > { %v740_v39 = vadd.f32 %v1150_v36, %v736_v38  ;;  %v814_v40 = vpop.f32.mrf.mxu1 }
 0x295   : > { %v818_v41 = vadd.f32 %v1152_v37, %v814_v40  ;;  %v1256_v42 = vpop.f32.mrf.mxu0 }
 0x296   : > { %1325 = vtanh.f32 %v740_v39  ;;  %v1267_v43 = vpop.f32.mrf.mxu1 }
 0x297   : > { %1327 = vtanh.f32 %v818_v41 }
 0x2a3   : > { %v1326_v44 = vpop.eup %1325 }
 0x2a4   : > { %v1328_v45 = vpop.eup %1327  ;;  %1154 = vst.msk [vmem:[%s1421_s10 + $0x10] sm:$0xff] %vm343_vm1, %v1326_v44  ;;  %820 = vst.msk [vmem:[#allocation2] sm:$0xff] %vm343_vm1, %v1326_v44 }
 0x2a5   : > { %1155 = vst.msk [vmem:[%s1426_s13 + $0x8] sm:$0xff] %vm343_vm1, %v1328_v45  ;;  %821 = vst.msk [vmem:[#allocation3] sm:$0xff] %vm343_vm1, %v1328_v45 }
 0x2ab   : > { %v828_v46 = vld [vmem:[#allocation2] sm:$0xff] }
 0x2ac   : > { %1277 = vmatmul.mubr.msk.f32.vlgmr.msra.gmra.mxu0 %vm343_vm1, %v828_v46  ;;  %v905_v47 = vld [vmem:[#allocation3] sm:$0xff] }
 0x2ad   : > { %1288 = vmatmul.mubr.msk.f32.vlgmr.msra.gmra.mxu1 %vm343_vm1, %v905_v47 }
 0x36c   : > { %v898_v50 = vpop.f32.mrf.mxu0 }
 0x36d   : > { %v902_v51 = vadd.f32 %v1156_v48, %v898_v50  ;;  %v975_v52 = vpop.f32.mrf.mxu1 }
 0x36e   : > { %v979_v53 = vadd.f32 %v975_v52, %v904_v49  ;;  %v1278_v54 = vpop.f32.mrf.mxu0 }
 0x36f   : > { %1329 = vtanh.f32 %v902_v51  ;;  %v1289_v55 = vpop.f32.mrf.mxu1 }
 0x370   : > { %1331 = vtanh.f32 %v979_v53 }
 0x37c   : > { %v1330_v56 = vpop.eup %1329 }
 0x37d   : > { %v1332_v57 = vpop.eup %1331  ;;  %981 = vst.msk [vmem:[#allocation2] sm:$0xff] %vm343_vm1, %v1330_v56  ;;  %1159 = vst.msk [vmem:[%s1421_s10 + $0x18] sm:$0xff] %vm343_vm1, %v1330_v56 }
 0x37e   : > { %982 = vst.msk [vmem:[#allocation3] sm:$0xff] %vm343_vm1, %v1332_v57  ;;  %985 = vst.msk [vmem:[%s1426_s13] sm:$0xff] %vm343_vm1, %v1332_v57 }
 0x37f PF: > { %s16_s20 = sadd.s32 1, %s1355_s20   ;;  %s1603_s18 = smov %s1351_s19 }
 0x380   : > { %p13_p7 = scmp.ge.s32.totalorder %s16_s20, 4   ;;  %s1604_s19 = smov %s1606_s21 }
 0x382   :  { %15 = sbr.rel (!%p13_p7) target bundleno = 2 (0x2), region = 97 }

</bundles_post_ra>
